<compile_context>
chip_gen: v7x
topology: tpu7x:2x2x1
jax: 0.10.0
libtpu: 0.0.40
codegen_flags: <defaults>
</compile_context>

<pallas_src>
import functools

import numpy as np
import jax
import jax.numpy as jnp
from jax.experimental import pallas as pl
from jax.experimental.pallas import tpu as pltpu


# ----------------------------------------------------------------------------
# Host-side parameter helpers
# ----------------------------------------------------------------------------
def mean_to_var(isolines, halfway_value):
    iso = np.asarray(isolines, np.float64).reshape(-1)
    mat = (iso[:, None] - iso[None, :]) ** 2          # squared cdist
    mat = np.where(mat == 0.0, np.inf, mat)
    variances = -mat.min(axis=0) / (8.0 * np.log(halfway_value))
    return variances.astype(np.float32)


def _interp_matrix_1d(out_size, in_size):
    """PyTorch F.interpolate(mode='bilinear', align_corners=False) 1-D weights."""
    scale = in_size / out_size
    o = np.arange(out_size, dtype=np.float64)
    src = np.maximum((o + 0.5) * scale - 0.5, 0.0)
    i0 = np.minimum(np.floor(src).astype(np.int64), in_size - 1)
    i1 = np.minimum(i0 + 1, in_size - 1)
    w1 = src - i0
    w0 = 1.0 - w1
    r = np.zeros((out_size, in_size), np.float64)
    r[np.arange(out_size), i0] += w0
    r[np.arange(out_size), i1] += w1
    return r.astype(np.float32)


def _vmem_limit(block_bytes, scratch_bytes=0):
    need = 2 * block_bytes + scratch_bytes + (4 << 20)   # dbl-buffered blocks + scratch + headroom
    return int(min(max(need, 16 << 20), 100 << 20))


# ----------------------------------------------------------------------------
# Kernel 1 (per scale): fused gaussian isolines + separable bilinear resize.
#   For each isoline k (incl. the optional mask row, neg_inv_var=0):
#     iso_k[h,w]  = mask[h,w] * exp((c_k - dm[h,w])^2 * neg_inv_var_k)
#     u           = iso_rows @ R_w^T          (batched over k along sublanes)
#     out[b,k]    = R_h @ u_k                 (Hs, Ws)
# ----------------------------------------------------------------------------
def _iso_resize_kernel(dm_ref, mask_ref, rh_ref, rwt_ref, out_ref, iso_rows_ref,
                       *, centers, neg_inv_vars):
    dm = dm_ref[0]                               # (H, W)
    m = mask_ref[0]                              # (H, W)
    H = dm.shape[0]
    kp = len(centers)

    # Gaussian responses stacked along sublanes into a (Kp*H, W) scratch.
    for k in range(kp):
        d = centers[k] - dm
        iso_rows_ref[k * H:(k + 1) * H, :] = m * jnp.exp(d * d * neg_inv_vars[k])

    # W-resize for all isolines in one MXU matmul: (Kp*H, W) @ (W, Ws).
    u = jnp.dot(iso_rows_ref[...], rwt_ref[...], preferred_element_type=jnp.float32)

    # H-resize per isoline: (Hs, H) @ (H, Ws) -> (Hs, Ws).
    rh = rh_ref[...]
    for k in range(kp):
        out_ref[0, k] = jnp.dot(rh, u[k * H:(k + 1) * H, :],
                                preferred_element_type=jnp.float32)


def gaussian_isolines_resized(dm, mask, rh, rwt, centers, neg_inv_vars):
    """dm, mask: (B,H,W) f32; rh: (Hs,H); rwt: (W,Ws) -> (B, Kp, Hs, Ws)."""
    B, H, W = dm.shape
    Hs = rh.shape[0]
    Ws = rwt.shape[1]
    kp = len(centers)

    kernel = functools.partial(_iso_resize_kernel,
                               centers=centers, neg_inv_vars=neg_inv_vars)
    block_bytes = 4 * (2 * H * W + Hs * H + W * Ws + kp * Hs * Ws)
    scratch_bytes = 4 * kp * H * W

    return pl.pallas_call(
        kernel,
        out_shape=jax.ShapeDtypeStruct((B, kp, Hs, Ws), jnp.float32),
        grid_spec=pltpu.PrefetchScalarGridSpec(
            num_scalar_prefetch=0,
            grid=(B,),
            in_specs=[
                pl.BlockSpec((1, H, W), lambda b: (b, 0, 0)),     # distance map
                pl.BlockSpec((1, H, W), lambda b: (b, 0, 0)),     # mask
                pl.BlockSpec((Hs, H), lambda b: (0, 0)),          # R_h
                pl.BlockSpec((W, Ws), lambda b: (0, 0)),          # R_w^T
            ],
            out_specs=pl.BlockSpec((1, kp, Hs, Ws), lambda b: (b, 0, 0, 0)),
            scratch_shapes=[pltpu.VMEM((kp * H, W), jnp.float32)],
        ),
        compiler_params=pltpu.CompilerParams(
            dimension_semantics=("parallel",),
            vmem_limit_bytes=_vmem_limit(block_bytes, scratch_bytes),
        ),
    )(dm, mask, rh, rwt)


# ----------------------------------------------------------------------------
# Kernel 2 (per scale): weighted spatial reduction as a single MXU matmul.
#   out[b, k, c] = sum_ps iso_s[b, k, ps] * act_ext[b, ps, c]
#   act_ext has a trailing ones column, so out[..., C] is the denominator.
# ----------------------------------------------------------------------------
def _features_matmul_kernel(iso_ref, act_ref, out_ref):
    out_ref[0] = jnp.dot(iso_ref[0], act_ref[0], preferred_element_type=jnp.float32)


def isoline_features_matmul(iso_s_flat, act_ext):
    """iso_s_flat: (B,Kp,Ps); act_ext: (B,Ps,C+1) -> (B, Kp, C+1) (lane-dense in C)."""
    B, kp, Ps = iso_s_flat.shape
    C1 = act_ext.shape[-1]
    block_bytes = 4 * (kp * Ps + Ps * C1 + kp * C1)

    return pl.pallas_call(
        _features_matmul_kernel,
        out_shape=jax.ShapeDtypeStruct((B, kp, C1), jnp.float32),
        grid_spec=pltpu.PrefetchScalarGridSpec(
            num_scalar_prefetch=0,
            grid=(B,),
            in_specs=[
                pl.BlockSpec((1, kp, Ps), lambda b: (b, 0, 0)),
                pl.BlockSpec((1, Ps, C1), lambda b: (b, 0, 0)),
            ],
            out_specs=pl.BlockSpec((1, kp, C1), lambda b: (b, 0, 0)),
        ),
        compiler_params=pltpu.CompilerParams(
            dimension_semantics=("parallel",),
            vmem_limit_bytes=_vmem_limit(block_bytes),
        ),
    )(iso_s_flat, act_ext)


# ----------------------------------------------------------------------------
# Module
# ----------------------------------------------------------------------------
class DistanceMapToIsolineFeatures:
    def __init__(self, activations, isolines, halfway_value=0.5,
                 compute_features_mask=False):
        self.activations = activations
        self.compute_features_mask = compute_features_mask

        iso_np = np.asarray(isolines, np.float32).reshape(-1)
        var_np = mean_to_var(iso_np, halfway_value)
        self.isolines = jnp.asarray(iso_np)
        self.vars = jnp.asarray(var_np)
        self._num_isolines = int(iso_np.shape[0])

        # Baked-in scalar constants (neg_inv_var multiply instead of divide).
        with np.errstate(divide="ignore"):
            niv_np = -1.0 / var_np.astype(np.float64)      # inf variance -> -0.0
        centers = tuple(float(c) for c in iso_np)
        nivs = tuple(float(v) for v in niv_np)
        if compute_features_mask:
            # Extra row: neg_inv_var = 0  =>  exp(0) = 1  =>  row == mask.
            centers = centers + (0.0,)
            nivs = nivs + (0.0,)
        self._centers = centers
        self._neg_inv_vars = nivs

        # Cache activations in (B, Ps, C+1) layout (ones column folds the
        # denominator into the feature matmul; C on the lane axis of the output).
        self._acts = []
        for i in range(len(activations)):
            a = jnp.asarray(activations[i], jnp.float32)
            Ba, C, Hs, Ws = a.shape
            a_t = jnp.transpose(a.reshape(Ba, C, Hs * Ws), (0, 2, 1))   # (B, Ps, C)
            ones = jnp.ones((Ba, Hs * Ws, 1), jnp.float32)
            self._acts.append((jnp.concatenate([a_t, ones], axis=-1), C, Hs, Ws))

        # Lazy cache of separable interpolation matrices, keyed by resolution.
        self._resize_cache = {}

    def _get_resize(self, Hs, Ws, H, W):
        key = (Hs, Ws, H, W)
        if key not in self._resize_cache:
            rh = jnp.asarray(_interp_matrix_1d(Hs, H))       # (Hs, H)
            rwt = jnp.asarray(_interp_matrix_1d(Ws, W).T)    # (W, Ws)
            self._resize_cache[key] = (rh, rwt)
        return self._resize_cache[key]

    def __call__(self, distance_map, mask):
        B = distance_map.shape[0]
        H, W = distance_map.shape[-2:]
        dm = distance_map.reshape(B, H, W).astype(jnp.float32)
        mk = mask.reshape(B, H, W).astype(jnp.float32)
        K = self._num_isolines

        features_isolines, features_mask = [], []
        for act_ext, C, Hs, Ws in self._acts:
            rh, rwt = self._get_resize(Hs, Ws, H, W)

            # Fused gaussian + separable resize: (B, Kp, Hs, Ws).
            iso_s = gaussian_isolines_resized(dm, mk, rh, rwt,
                                              self._centers, self._neg_inv_vars)
            iso_s_flat = iso_s.reshape(B, iso_s.shape[1], Hs * Ws)      # free reshape

            # One matmul per batch: numerators and denominators together.
            out_ext = isoline_features_matmul(iso_s_flat, act_ext)      # (B, Kp, C+1)

            num = out_ext[..., :C]                                      # (B, Kp, C)
            den = out_ext[..., C:]                                      # (B, Kp, 1)
            # NOTE: like the PyTorch reference, den == 0 yields inf/nan (no eps).
            feats = num[:, :K, :] / den[:, :K, :]                       # (B, K, C)
            features_isolines.append(jnp.transpose(feats, (0, 2, 1)))   # (B, C, K)

            if self.compute_features_mask:
                features_mask.append(num[:, K, :] / den[:, K, :])       # (B, C)

        return features_isolines, features_mask


# ----------------------------------------------------------------------------
# Pure-JAX reference (dense formulation) for an in-script correctness check.
# ----------------------------------------------------------------------------
def _bilinear_resize_ref(x, Hs, Ws):
    B, K, H, W = x.shape
    rh = jnp.asarray(_interp_matrix_1d(Hs, H))
    rw = jnp.asarray(_interp_matrix_1d(Ws, W))
    return jnp.einsum("sh,bkhw,tw->bkst", rh, x, rw)


def _reference_forward(activations, isolines, variances, distance_map, mask,
                       compute_features_mask):
    iso = isolines.reshape(1, -1, 1, 1)
    var = variances.reshape(1, -1, 1, 1)
    iso_maps = mask * jnp.exp(-((iso - distance_map) ** 2) / var)       # (B,K,H,W)
    f_iso, f_mask = [], []
    for i in range(len(activations)):
        a = jnp.asarray(activations[i], jnp.float32)
        Hs, Ws = a.shape[-2:]
        iso_s = _bilinear_resize_ref(iso_maps, Hs, Ws)
        num = jnp.einsum("bchw,bkhw->bck", a, iso_s)
        den = jnp.sum(iso_s, axis=(-2, -1))[:, None, :]
        f_iso.append(num / den)
        if compute_features_mask:
            m_s = _bilinear_resize_ref(mask.astype(jnp.float32), Hs, Ws)
            num_m = jnp.sum(a * m_s, axis=(-2, -1))
            den_m = jnp.sum(m_s, axis=(-2, -1))
            f_mask.append(num_m / den_m)
    return f_iso, f_mask


if __name__ == "__main__":
    key = jax.random.PRNGKey(0)
    k1, k2, k3, k4 = jax.random.split(key, 4)

    B, H, W = 2, 16, 16
    distance_map = jax.random.uniform(k1, (B, 1, H, W), jnp.float32)
    mask = (jax.random.uniform(k2, (B, 1, H, W)) > 0.3).astype(jnp.float32)

    activations = {
        0: jax.random.normal(k3, (B, 4, 16, 16), jnp.float32),
        1: jax.random.normal(k4, (B, 8, 8, 8), jnp.float32),
    }
    isolines = jnp.array([0.0, 0.5, 0.8], jnp.float32)

    module = DistanceMapToIsolineFeatures(
        activations, isolines, halfway_value=0.5, compute_features_mask=True)

    feats_iso, feats_mask = module(distance_map, mask)
    jax.block_until_ready(feats_iso)
    jax.block_until_ready(feats_mask)

    assert feats_iso[0].shape == (B, 4, 3) and feats_iso[1].shape == (B, 8, 3)
    assert feats_mask[0].shape == (B, 4) and feats_mask[1].shape == (B, 8)

    ref_iso, ref_mask = _reference_forward(
        activations, module.isolines, module.vars, distance_map, mask, True)
    for got, ref in zip(feats_iso, ref_iso):
        np.testing.assert_allclose(np.asarray(got), np.asarray(ref),
                                   rtol=1e-4, atol=1e-4)
    for got, ref in zip(feats_mask, ref_mask):
        np.testing.assert_allclose(np.asarray(got), np.asarray(ref),
                                   rtol=1e-4, atol=1e-4)

    print("KERNEL_OK")
</pallas_src>

<mosaic_0001>
module attributes {stable_mosaic.version = 11 : i64} {
  func.func @_iso_resize_kernel(%arg0: i32, %arg1: memref<1x16x16xf32, #tpu.memory_space<vmem>>, %arg2: memref<1x16x16xf32, #tpu.memory_space<vmem>>, %arg3: memref<16x16xf32, #tpu.memory_space<vmem>>, %arg4: memref<16x16xf32, #tpu.memory_space<vmem>>, %arg5: memref<1x4x16x16xf32, #tpu.memory_space<vmem>>, %arg6: memref<64x16xf32, #tpu.memory_space<vmem>>) attributes {dimension_semantics = [#tpu.dimension_semantics<parallel>], iteration_bounds = array<i64: 2>, scalar_prefetch = 0 : i64, scratch_operands = 1 : i64, tpu.core_type = #tpu.core_type<tc>, window_params = [{transform_indices = @transform_0, window_bounds = array<i64: 1, 16, 16>}, {transform_indices = @transform_1, window_bounds = array<i64: 1, 16, 16>}, {pipeline_mode = #tpu.pipeline_mode<synchronous>, transform_indices = @transform_2, window_bounds = array<i64: 16, 16>}, {pipeline_mode = #tpu.pipeline_mode<synchronous>, transform_indices = @transform_3, window_bounds = array<i64: 16, 16>}, {transform_indices = @transform_4, window_bounds = array<i64: 1, 4, 16, 16>}]} {
    %c0 = arith.constant 0 : index
    %c0_0 = arith.constant 0 : index
    %c0_1 = arith.constant 0 : index
    %0 = vector.load %arg1[%c0, %c0_0, %c0_1] : memref<1x16x16xf32, #tpu.memory_space<vmem>>, vector<1x16x16xf32>
    %1 = vector.shape_cast %0 : vector<1x16x16xf32> to vector<16x16xf32>
    %c0_2 = arith.constant 0 : index
    %c0_3 = arith.constant 0 : index
    %c0_4 = arith.constant 0 : index
    %2 = vector.load %arg2[%c0_2, %c0_3, %c0_4] : memref<1x16x16xf32, #tpu.memory_space<vmem>>, vector<1x16x16xf32>
    %3 = vector.shape_cast %2 : vector<1x16x16xf32> to vector<16x16xf32>
    %cst = arith.constant 0.000000e+00 : f32
    %4 = vector.broadcast %cst : f32 to vector<16x16xf32>
    %5 = arith.subf %4, %1 : vector<16x16xf32>
    %6 = arith.mulf %5, %5 : vector<16x16xf32>
    %cst_5 = arith.constant -22.1807098 : f32
    %7 = vector.broadcast %cst_5 : f32 to vector<16x16xf32>
    %8 = arith.mulf %6, %7 : vector<16x16xf32>
    %9 = math.exp %8 : vector<16x16xf32>
    %10 = arith.mulf %3, %9 : vector<16x16xf32>
    %c0_6 = arith.constant 0 : index
    %c0_7 = arith.constant 0 : index
    %11 = vector.load %arg6[%c0_6, %c0_7] : memref<64x16xf32, #tpu.memory_space<vmem>>, vector<16x16xf32>
    tpu.vector_store %arg6[%c0_6, %c0_7], %10 {strides = array<i32>} : memref<64x16xf32, #tpu.memory_space<vmem>>, vector<16x16xf32>,
    %cst_8 = arith.constant 5.000000e-01 : f32
    %12 = vector.broadcast %cst_8 : f32 to vector<16x16xf32>
    %13 = arith.subf %12, %1 : vector<16x16xf32>
    %14 = arith.mulf %13, %13 : vector<16x16xf32>
    %cst_9 = arith.constant -61.6130791 : f32
    %15 = vector.broadcast %cst_9 : f32 to vector<16x16xf32>
    %16 = arith.mulf %14, %15 : vector<16x16xf32>
    %17 = math.exp %16 : vector<16x16xf32>
    %18 = arith.mulf %3, %17 : vector<16x16xf32>
    %c16 = arith.constant 16 : index
    %c0_10 = arith.constant 0 : index
    %19 = vector.load %arg6[%c16, %c0_10] : memref<64x16xf32, #tpu.memory_space<vmem>>, vector<16x16xf32>
    tpu.vector_store %arg6[%c16, %c0_10], %18 {strides = array<i32>} : memref<64x16xf32, #tpu.memory_space<vmem>>, vector<16x16xf32>,
    %cst_11 = arith.constant 8.000000e-01 : f32
    %20 = vector.broadcast %cst_11 : f32 to vector<16x16xf32>
    %21 = arith.subf %20, %1 : vector<16x16xf32>
    %22 = arith.mulf %21, %21 : vector<16x16xf32>
    %cst_12 = arith.constant -61.6130791 : f32
    %23 = vector.broadcast %cst_12 : f32 to vector<16x16xf32>
    %24 = arith.mulf %22, %23 : vector<16x16xf32>
    %25 = math.exp %24 : vector<16x16xf32>
    %26 = arith.mulf %3, %25 : vector<16x16xf32>
    %c32 = arith.constant 32 : index
    %c0_13 = arith.constant 0 : index
    %27 = vector.load %arg6[%c32, %c0_13] : memref<64x16xf32, #tpu.memory_space<vmem>>, vector<16x16xf32>
    tpu.vector_store %arg6[%c32, %c0_13], %26 {strides = array<i32>} : memref<64x16xf32, #tpu.memory_space<vmem>>, vector<16x16xf32>,
    %cst_14 = arith.constant 0.000000e+00 : f32
    %28 = vector.broadcast %cst_14 : f32 to vector<16x16xf32>
    %29 = arith.subf %28, %1 : vector<16x16xf32>
    %30 = arith.mulf %29, %29 : vector<16x16xf32>
    %cst_15 = arith.constant 0.000000e+00 : f32
    %31 = vector.broadcast %cst_15 : f32 to vector<16x16xf32>
    %32 = arith.mulf %30, %31 : vector<16x16xf32>
    %33 = math.exp %32 : vector<16x16xf32>
    %34 = arith.mulf %3, %33 : vector<16x16xf32>
    %c48 = arith.constant 48 : index
    %c0_16 = arith.constant 0 : index
    %35 = vector.load %arg6[%c48, %c0_16] : memref<64x16xf32, #tpu.memory_space<vmem>>, vector<16x16xf32>
    tpu.vector_store %arg6[%c48, %c0_16], %34 {strides = array<i32>} : memref<64x16xf32, #tpu.memory_space<vmem>>, vector<16x16xf32>,
    %c0_17 = arith.constant 0 : index
    %c0_18 = arith.constant 0 : index
    %36 = vector.load %arg6[%c0_17, %c0_18] : memref<64x16xf32, #tpu.memory_space<vmem>>, vector<64x16xf32>
    %c0_19 = arith.constant 0 : index
    %c0_20 = arith.constant 0 : index
    %37 = vector.load %arg4[%c0_19, %c0_20] : memref<16x16xf32, #tpu.memory_space<vmem>>, vector<16x16xf32>
    %cst_21 = arith.constant dense<0.000000e+00> : vector<64x16xf32>
    %38 = tpu.matmul %36, %37, %cst_21 {dimension_numbers = #tpu.dot_dimension_numbers<[1], [0], [0], [1], [0, 0, 1, 1], [], []>} : vector<64x16xf32>, vector<16x16xf32>, vector<64x16xf32> -> vector<64x16xf32>
    %c0_22 = arith.constant 0 : index
    %c0_23 = arith.constant 0 : index
    %39 = vector.load %arg3[%c0_22, %c0_23] : memref<16x16xf32, #tpu.memory_space<vmem>>, vector<16x16xf32>
    %40 = vector.extract_strided_slice %38 {offsets = [0, 0], sizes = [16, 16], strides = [1, 1]} : vector<64x16xf32> to vector<16x16xf32>
    %cst_24 = arith.constant dense<0.000000e+00> : vector<16x16xf32>
    %41 = tpu.matmul %39, %40, %cst_24 {dimension_numbers = #tpu.dot_dimension_numbers<[1], [0], [0], [1], [0, 0, 1, 1], [], []>} : vector<16x16xf32>, vector<16x16xf32>, vector<16x16xf32> -> vector<16x16xf32>
    %c0_25 = arith.constant 0 : index
    %c0_26 = arith.constant 0 : index
    %c0_27 = arith.constant 0 : index
    %c0_28 = arith.constant 0 : index
    %42 = vector.load %arg5[%c0_25, %c0_26, %c0_27, %c0_28] : memref<1x4x16x16xf32, #tpu.memory_space<vmem>>, vector<1x1x16x16xf32>
    %43 = vector.shape_cast %42 : vector<1x1x16x16xf32> to vector<16x16xf32>
    %44 = vector.shape_cast %41 : vector<16x16xf32> to vector<1x1x16x16xf32>
    tpu.vector_store %arg5[%c0_25, %c0_26, %c0_27, %c0_28], %44 {strides = array<i32>} : memref<1x4x16x16xf32, #tpu.memory_space<vmem>>, vector<1x1x16x16xf32>,
    %45 = vector.extract_strided_slice %38 {offsets = [16, 0], sizes = [16, 16], strides = [1, 1]} : vector<64x16xf32> to vector<16x16xf32>
    %cst_29 = arith.constant dense<0.000000e+00> : vector<16x16xf32>
    %46 = tpu.matmul %39, %45, %cst_29 {dimension_numbers = #tpu.dot_dimension_numbers<[1], [0], [0], [1], [0, 0, 1, 1], [], []>} : vector<16x16xf32>, vector<16x16xf32>, vector<16x16xf32> -> vector<16x16xf32>
    %c0_30 = arith.constant 0 : index
    %c1 = arith.constant 1 : index
    %c0_31 = arith.constant 0 : index
    %c0_32 = arith.constant 0 : index
    %47 = vector.load %arg5[%c0_30, %c1, %c0_31, %c0_32] : memref<1x4x16x16xf32, #tpu.memory_space<vmem>>, vector<1x1x16x16xf32>
    %48 = vector.shape_cast %47 : vector<1x1x16x16xf32> to vector<16x16xf32>
    %49 = vector.shape_cast %46 : vector<16x16xf32> to vector<1x1x16x16xf32>
    tpu.vector_store %arg5[%c0_30, %c1, %c0_31, %c0_32], %49 {strides = array<i32>} : memref<1x4x16x16xf32, #tpu.memory_space<vmem>>, vector<1x1x16x16xf32>,
    %50 = vector.extract_strided_slice %38 {offsets = [32, 0], sizes = [16, 16], strides = [1, 1]} : vector<64x16xf32> to vector<16x16xf32>
    %cst_33 = arith.constant dense<0.000000e+00> : vector<16x16xf32>
    %51 = tpu.matmul %39, %50, %cst_33 {dimension_numbers = #tpu.dot_dimension_numbers<[1], [0], [0], [1], [0, 0, 1, 1], [], []>} : vector<16x16xf32>, vector<16x16xf32>, vector<16x16xf32> -> vector<16x16xf32>
    %c0_34 = arith.constant 0 : index
    %c2 = arith.constant 2 : index
    %c0_35 = arith.constant 0 : index
    %c0_36 = arith.constant 0 : index
    %52 = vector.load %arg5[%c0_34, %c2, %c0_35, %c0_36] : memref<1x4x16x16xf32, #tpu.memory_space<vmem>>, vector<1x1x16x16xf32>
    %53 = vector.shape_cast %52 : vector<1x1x16x16xf32> to vector<16x16xf32>
    %54 = vector.shape_cast %51 : vector<16x16xf32> to vector<1x1x16x16xf32>
    tpu.vector_store %arg5[%c0_34, %c2, %c0_35, %c0_36], %54 {strides = array<i32>} : memref<1x4x16x16xf32, #tpu.memory_space<vmem>>, vector<1x1x16x16xf32>,
    %55 = vector.extract_strided_slice %38 {offsets = [48, 0], sizes = [16, 16], strides = [1, 1]} : vector<64x16xf32> to vector<16x16xf32>
    %cst_37 = arith.constant dense<0.000000e+00> : vector<16x16xf32>
    %56 = tpu.matmul %39, %55, %cst_37 {dimension_numbers = #tpu.dot_dimension_numbers<[1], [0], [0], [1], [0, 0, 1, 1], [], []>} : vector<16x16xf32>, vector<16x16xf32>, vector<16x16xf32> -> vector<16x16xf32>
    %c0_38 = arith.constant 0 : index
    %c3 = arith.constant 3 : index
    %c0_39 = arith.constant 0 : index
    %c0_40 = arith.constant 0 : index
    %57 = vector.load %arg5[%c0_38, %c3, %c0_39, %c0_40] : memref<1x4x16x16xf32, #tpu.memory_space<vmem>>, vector<1x1x16x16xf32>
    %58 = vector.shape_cast %57 : vector<1x1x16x16xf32> to vector<16x16xf32>
    %59 = vector.shape_cast %56 : vector<16x16xf32> to vector<1x1x16x16xf32>
    tpu.vector_store %arg5[%c0_38, %c3, %c0_39, %c0_40], %59 {strides = array<i32>} : memref<1x4x16x16xf32, #tpu.memory_space<vmem>>, vector<1x1x16x16xf32>,
    return
  }
  func.func @transform_0(%arg0: i32) -> (i32, i32, i32) {
    %c0_i32 = arith.constant 0 : i32
    %c0_i32_0 = arith.constant 0 : i32
    %c0_i32_1 = arith.constant 0 : i32
    return %arg0, %c0_i32, %c0_i32_0 : i32, i32, i32
  }
  func.func @transform_1(%arg0: i32) -> (i32, i32, i32) {
    %c0_i32 = arith.constant 0 : i32
    %c0_i32_0 = arith.constant 0 : i32
    %c0_i32_1 = arith.constant 0 : i32
    return %arg0, %c0_i32, %c0_i32_0 : i32, i32, i32
  }
  func.func @transform_2(%arg0: i32) -> (i32, i32) {
    %c0_i32 = arith.constant 0 : i32
    %c0_i32_0 = arith.constant 0 : i32
    %c0_i32_1 = arith.constant 0 : i32
    return %c0_i32, %c0_i32_0 : i32, i32
  }
  func.func @transform_3(%arg0: i32) -> (i32, i32) {
    %c0_i32 = arith.constant 0 : i32
    %c0_i32_0 = arith.constant 0 : i32
    %c0_i32_1 = arith.constant 0 : i32
    return %c0_i32, %c0_i32_0 : i32, i32
  }
  func.func @transform_4(%arg0: i32) -> (i32, i32, i32, i32) {
    %c0_i32 = arith.constant 0 : i32
    %c0_i32_0 = arith.constant 0 : i32
    %c0_i32_1 = arith.constant 0 : i32
    %c0_i32_2 = arith.constant 0 : i32
    return %arg0, %c0_i32, %c0_i32_0, %c0_i32_1 : i32, i32, i32, i32
  }
}

</mosaic_0001>

<bundles_post_ra>
// kernel: tpu_custom_call.1
= control target key start
LH: loop header
LB: loop body
LE: loop exit
PB: predicated region body
PF: predicated region fallthrough
CT: control target
= control target key end

     0   :  { %s1717_s0 = inlined_call_operand.hbm [shape: f32[2,16,16], index: 0, kind: input, shape index: {}]   ;;  %s1718_s1 = inlined_call_operand.hbm [shape: f32[2,16,16], index: 1, kind: input, shape index: {}]   ;;  %s1719_s2 = inlined_call_operand.hbm [shape: f32[16,16], index: 2, kind: input, shape index: {}]   ;;  %s1720_s3 = inlined_call_operand.hbm [shape: f32[16,16], index: 3, kind: input, shape index: {}]   ;;  %s1721_s4 = inlined_call_operand.hbm [shape: f32[2,4,16,16], index: 4, kind: output, shape index: {}]  }
   0x1   :  { %1729 = sst [smem:[#allocation17_spill]] %s1717_s0 }
   0x2   :  { %9 = vsyncpa [#allocation4], 0 }
   0x3   :  { %11 = vsyncpa [#allocation4 + $0x1], 0 }
   0x4   :  { %12 = vsyncpa [#allocation7], 0 }
   0x5   :  { %14 = vsyncpa [#allocation7 + $0x1], 0 }
   0x6   :  { %15 = vsyncpa [#allocation10], 0 }
   0x7   :  { %16 = vsyncpa [#allocation5], 0 }
   0x8   :  { %18 = vsyncpa [#allocation5 + $0x1], 0  ;;  %s1388_s15 = smov 0   ;;  %s1390_s16 = smov 0  }
   0x9   :  { %s1392_s17 = smov 0   ;;  %s1394_s18 = smov 0  }
   0xa LB: > { %s1409_s19 = sadd.s32 4294967295, %s1352_s18   ;;  %s929_s20 = sadd.s32 4294967294, %s1352_s18   ;;  %s1352_s18 = sphi %s1394_s18, %s1751_s18   ;;  %s1348_s17 = sphi %s1392_s17, %s1750_s17   ;;  %s1344_s16 = sphi %s1390_s16, %s1749_s16   ;;  %s1340_s15 = sphi %s1388_s15, %s1748_s15  }
   0xb   : > { %p44_p0 = scmp.ne.s32.totalorder %s1344_s16, %s1340_s15  ;;  %p1722_p1 = scmp.eq.s32.totalorder %s1409_s19, 0 }
   0xc   : > { %p142_p3 = scmp.eq.s32.totalorder %s929_s20, 1  ;;  %p930_p5 = scmp.ge.s32.totalorder %s1352_s18, 1 }
   0xd   : > { %p1418_p4 = por %p1722_p1, %p44_p0  ;;  %p149_p7 = scmp.lt.s32.totalorder %s1352_s18, 3 }
   0xe   : > { %p1423_p6 = por %p142_p3, %p44_p0  ;;  %s1354_s24 = smov [#allocation8]  }
   0xf   : > { %s1730_s21 = scalar_select %p1418_p4, 1, 0 }
  0x10   : > { %s1731_s22 = scalar_select %p1423_p6, 1, 0 }
  0x11   : > { %p1428_p8 = pnand %p930_p5, %p149_p7  ;;  %s161_s25 = sshll.u32 %s1354_s24, 4  ;;  %s1432_s25 = int_to_ptr.vmem [resolvable:$true] %s161_s25 }
  0x12   : > { %s1355_s27 = smov [#allocation9]   ;;  %s1158_s5 = scalar_lea.hbm %s1719_s2, 256 }
  0x13   : > { %p1080_p9 = pneg %p1428_p8  ;;  %s174_s28 = sshll.u32 %s1355_s27, 4  ;;  %s1443_s28 = int_to_ptr.vmem [resolvable:$true] %s174_s28 }
  0x14   : > { %p1159_p12 = scmp.ne.s32.totalorder %s1719_s2, %s1158_s5  ;;  %p1165_p5 = scmp.lt.u32.totalorder %s1158_s5, %s1719_s2 }
  0x15   : > { %p1439_p11 = pnand %p1080_p9, %p1722_p1 }
  0x17   : > { %p1160_p13 = pneg %p1439_p11 }
  0x19   : > { %p1161_p0 = pnand %p1160_p13, %p1159_p12 }
  0x1b   : > { %p1162_p3 = pneg %p1161_p0 }
  0x1d   : > { %p1167_p7 = pnand %p1165_p5, %p1162_p3 }
  0x1f   : > { %1170 = shalt.err (!%p1167_p7)
}
  0x20   : > { %s1171_s10 = scalar_lea.vmem %s1432_s25, 256  ;;  %p1179_p2 = scmp.lt.s32.totalorder %s1432_s25, %s1432_s25 }
  0x21   : > { %p1172_p9 = scmp.ne.s32.totalorder %s1432_s25, %s1171_s10  ;;  %p1180_p12 = scmp.lt.s32.totalorder %s1171_s10, %s1171_s10 }
  0x23   : > { %p1174_p10 = pnand %p1172_p9, %p1160_p13  ;;  %p1181_p0 = por %p1180_p12, %p1179_p2 }
  0x25   : > { %p1175_p1 = pneg %p1174_p10 }
  0x27   : > { %p1182_p6 = pnand %p1181_p0, %p1175_p1 }
  0x29   : > { %1185 = shalt.err (!%p1182_p6)
}
  0x2a   : > { %s1723_s11 = smov 128   ;;  %s1725_s12 = smov 8  }
  0x2b   : > { %1083 = dma.hbm_to_vmem [thread:$0]  (!%p1439_p11), %s1719_s2, 256, %s1432_s25, [#allocation7], %s1723_s11, %s1723_s11, %s1725_s12  }
  0x2c   : > { %s1186_s27 = scalar_lea.hbm %s1720_s3, 256 }
  0x2d   : > { %p1187_p1 = scmp.ne.s32.totalorder %s1720_s3, %s1186_s27  ;;  %p1193_p10 = scmp.lt.u32.totalorder %s1186_s27, %s1720_s3 }
  0x2f   : > { %p1189_p2 = pnand %p1187_p1, %p1160_p13 }
  0x31   : > { %p1190_p6 = pneg %p1189_p2 }
  0x33   : > { %p1195_p3 = pnand %p1193_p10, %p1190_p6 }
  0x35   : > { %1198 = shalt.err (!%p1195_p3)
}
  0x36   : > { %s1199_s25 = scalar_lea.vmem %s1443_s28, 256  ;;  %p1207_p12 = scmp.lt.s32.totalorder %s1443_s28, %s1443_s28 }
  0x37   : > { %p1200_p5 = scmp.ne.s32.totalorder %s1443_s28, %s1199_s25  ;;  %p1208_p0 = scmp.lt.s32.totalorder %s1199_s25, %s1199_s25 }
  0x39   : > { %p1202_p7 = pnand %p1200_p5, %p1160_p13  ;;  %p1209_p1 = por %p1208_p0, %p1207_p12 }
  0x3b   : > { %p1203_p9 = pneg %p1202_p7 }
  0x3d   : > { %p1210_p2 = pnand %p1209_p1, %p1203_p9 }
  0x3f   : > { %1213 = shalt.err (!%p1210_p2)
}
  0x40   : > { %1086 = dma.hbm_to_vmem [thread:$0]  (!%p1439_p11), %s1720_s3, 256, %s1443_s28, [#allocation10], %s1723_s11, %s1723_s11, %s1725_s12  }
  0x41   : > { %s1504_s26 = sadd.s32 1, %s1352_s18   ;;  %s31_s9 = sadd.s32 1, %s1348_s17 }
  0x42   : > { %s28_s10 = ssub.s32 %s1352_s18, %s1504_s26  ;;  %p38_p13 = scmp.ne.s32.totalorder %s1348_s17, %s1344_s16 }
  0x43   : > { %p29_p6 = scmp.eq.s32.totalorder %s28_s10, 0  ;;  %p39_p10 = scmp.eq.s32.totalorder %s1352_s18, 0 }
  0x44   : > { %p1734_p3 = scmp.eq.s32.totalorder %s1409_s19, 1  ;;  %p1100_p7 = scmp.lt.s32.totalorder %s1352_s18, 2 }
  0x45   : > { %s1520_s14 = scalar_select %p29_p6, %s1348_s17, %s31_s9  }
  0x46   : > { %p1514_p5 = por %p1734_p3, %p38_p13  ;;  %p40_p9 = por %p39_p10, %p38_p13 }
  0x47   : > { %s188_s20 = sand.u32 1, %s1348_s17   ;;  %s973_s28 = sshll.u32 %s1352_s18, 8 }
  0x48   : > { %s1735_s13 = scalar_select %p1514_p5, 1, 0 }
  0x49   : > { %s934_s24 = sshll.u32 %s188_s20, 4  ;;  %s1736_s0 = sld [smem:[#allocation17_spill]] }
  0x4a   : > { %s192_s5 = scalar_lea.vmem [#allocation3], %s934_s24  ;;  %p1531_p11 = pnand %p1100_p7, %p40_p9 }
  0x4b   : > { %s199_s6 = sshll.u32 %s192_s5, 4  ;;  %s1538_s9 = scalar_lea.hbm %s1718_s1, %s973_s28  ;;  %s1529_s6 = int_to_ptr.vmem [resolvable:$true] %s199_s6 }
  0x4c   : > { %s213_s10 = scalar_lea.vmem [#allocation6], %s934_s24  ;;  %s1542_s29 = scalar_lea.sflag [#allocation4], %s188_s20 }
  0x4d   : > { %s1540_s27 = sshll.u32 %s213_s10, 4  ;;  %p1216_p0 = pneg %p1531_p11  ;;  %s1574_s27 = int_to_ptr.vmem [resolvable:$true] %s1540_s27 }
  0x4f   : > { %s1527_s30 = scalar_lea.hbm %s1736_s0, %s973_s28  ;;  %s1219_s7 = scalar_lea.hbm %s1736_s0, 512 }
  0x50   : > { %s1214_s5 = scalar_lea.hbm %s1527_s30, 256  ;;  %p1220_p13 = scmp.lt.u32.totalorder %s1527_s30, %s1736_s0 }
  0x51   : > { %p1215_p12 = scmp.ne.s32.totalorder %s1527_s30, %s1214_s5  ;;  %p1221_p6 = scmp.lt.u32.totalorder %s1219_s7, %s1214_s5 }
  0x52   : > { %p1223_p3 = scmp.lt.u32.totalorder %s1214_s5, %s1527_s30 }
  0x53   : > { %p1217_p1 = pnand %p1216_p0, %p1215_p12  ;;  %p1222_p10 = por %p1221_p6, %p1220_p13 }
  0x55   : > { %p1218_p2 = pneg %p1217_p1  ;;  %p1224_p7 = por %p1223_p3, %p1222_p10 }
  0x57   : > { %p1225_p9 = pnand %p1224_p7, %p1218_p2 }
  0x59   : > { %1228 = shalt.err (!%p1225_p9)
}
  0x5a   : > { %s1229_s20 = scalar_lea.vmem %s1529_s6, 256  ;;  %s1358_s11 = smov [#allocation3]  }
  0x5b   : > { %p1230_p12 = scmp.ne.s32.totalorder %s1529_s6, %s1229_s20  ;;  %s1234_s12 = sshll.u32 %s1358_s11, 4  ;;  %s1235_s12 = int_to_ptr.vmem [resolvable:$false] %s1234_s12 }
  0x5c   : > { %s1236_s24 = scalar_lea.vmem %s1235_s12, 512  ;;  %p1237_p4 = scmp.lt.s32.totalorder %s1529_s6, %s1235_s12 }
  0x5d   : > { %p1232_p1 = pnand %p1230_p12, %p1216_p0  ;;  %p1238_p13 = scmp.lt.s32.totalorder %s1236_s24, %s1229_s20 }
  0x5f   : > { %p1233_p5 = pneg %p1232_p1  ;;  %p1239_p6 = por %p1238_p13, %p1237_p4 }
  0x61   : > { %p1240_p10 = pnand %p1239_p6, %p1233_p5 }
  0x63   : > { %1243 = shalt.err (!%p1240_p10)
}
  0x64   : > { %s1738_s10 = smov 8   ;;  %s1739_s5 = smov 128  }
  0x65   : > { %1090 = dma.hbm_to_vmem [thread:$0]  (!%p1531_p11), %s1527_s30, 256, %s1529_s6, %s1542_s29, %s1739_s5, %s1739_s5, %s1738_s10  }
  0x66   : > { %s209_s7 = sand.u32 1, %s1352_s18   ;;  %s1244_s28 = scalar_lea.hbm %s1538_s9, 256 }
  0x67   : > { %s1577_s8 = scalar_lea.sflag [#allocation7], %s209_s7  ;;  %p1245_p4 = scmp.ne.s32.totalorder %s1538_s9, %s1244_s28 }
  0x68   : > { %s1249_s12 = scalar_lea.hbm %s1718_s1, 512  ;;  %p1250_p3 = scmp.lt.u32.totalorder %s1538_s9, %s1718_s1 }
  0x69   : > { %p1247_p5 = pnand %p1245_p4, %p1216_p0  ;;  %p1251_p7 = scmp.lt.u32.totalorder %s1249_s12, %s1244_s28 }
  0x6a   : > { %p1253_p12 = scmp.lt.u32.totalorder %s1244_s28, %s1538_s9 }
  0x6b   : > { %p1248_p2 = pneg %p1247_p5  ;;  %p1252_p9 = por %p1251_p7, %p1250_p3 }
  0x6d   : > { %p1254_p1 = por %p1253_p12, %p1252_p9 }
  0x6f   : > { %p1255_p13 = pnand %p1254_p1, %p1248_p2 }
  0x71   : > { %1258 = shalt.err (!%p1255_p13)
}
  0x72   : > { %s1259_s30 = scalar_lea.vmem %s1574_s27, 256  ;;  %s1359_s6 = smov [#allocation6]  }
  0x73   : > { %p1260_p6 = scmp.ne.s32.totalorder %s1574_s27, %s1259_s30  ;;  %s1264_s29 = sshll.u32 %s1359_s6, 4  ;;  %s1265_s29 = int_to_ptr.vmem [resolvable:$false] %s1264_s29 }
  0x74   : > { %s1266_s0 = scalar_lea.vmem %s1265_s29, 512  ;;  %p1267_p5 = scmp.lt.s32.totalorder %s1574_s27, %s1265_s29 }
  0x75   : > { %p1262_p10 = pnand %p1260_p6, %p1216_p0  ;;  %p1268_p3 = scmp.lt.s32.totalorder %s1266_s0, %s1259_s30 }
  0x77   : > { %p1263_p4 = pneg %p1262_p10  ;;  %p1269_p7 = por %p1268_p3, %p1267_p5 }
  0x79   : > { %p1270_p9 = pnand %p1269_p7, %p1263_p4 }
  0x7b   : > { %1273 = shalt.err (!%p1270_p9)
}
  0x7c   : > { %1093 = dma.hbm_to_vmem [thread:$0]  (!%p1531_p11), %s1538_s9, 256, %s1574_s27, %s1577_s8, %s1739_s5, %s1739_s5, %s1738_s10  }
  0x7d   : > { %232 = sbr.rel (%p1428_p8) target bundleno = 633 (0x279), region = 36  ;;  %s1609_s7 = sand.u32 (!%p1428_p8), 1, %s1344_s16  }
  0x7e   : > { %s941_s28 = sshll.u32 (!%p1428_p8), %s1609_s7, 4  ;;  %s235_s20 = scalar_lea.sflag (!%p1428_p8), [#allocation4], %s1609_s7 }
  0x7f   : > { %s238_s11 = scalar_lea.vmem (!%p1428_p8), [#allocation3], %s941_s28  ;;  %p1740_p0 = scmp.ne.s32.totalorder (!%p1428_p8), %s1730_s21, 0 }
  0x84   : > { %1319 = dma.done.wait (%p1740_p0), %s235_s20, 256  }
  0x85   : > { %1321 = vsyncadd (%p1740_p0), %s235_s20, 4294967040  ;;  %s243_s25 = sand.u32 1, %s1409_s19   ;;  %s1618_s23 = scalar_lea.vmem [#allocation6], %s941_s28 }
  0x86   : > { %s244_s9 = scalar_lea.sflag [#allocation7], %s243_s25 }
  0x87   : > { %1323 = dma.done.wait (%p1740_p0), %s244_s9, 256  }
  0x88   : > { %1325 = vsyncadd (%p1740_p0), %s244_s9, 4294967040  ;;  %p1741_p8 = scmp.eq.s32.totalorder %s1409_s19, 0 }
  0x8a   : > { %1327 = dma.done.wait (%p1741_p8), [#allocation7], 256   ;;  %p1742_p11 = pmov %p1741_p8 }
  0x8b   : > { %p1743_p2 = pmov %p1741_p8 }
  0x8c   : > { %1329 = vsyncadd (%p1742_p11), [#allocation7], 4294967040 }
  0x8d   : > { %1331 = dma.done.wait (%p1743_p2), [#allocation10], 256   ;;  %p1744_p12 = pmov %p1743_p2 }
  0x8e   : > { %v350_v0 = vld [vmem:[#allocation9] sm:$0xff]  ;;  %v351_v1 = vld [vmem:[#allocation9 + $0x8] sm:$0xff]  ;;  %vm301_vm0 = vcmask 130048   ;;  %v481_v59 = vld [vmem:[#allocation8] sm:$0xff]  ;;  %s945_s21 = sshll.u32 %s1609_s7, 6  ;;  %s975_s5 = sshll.u32 %s1409_s19, 10 }
  0x8f   : > { %1333 = vsyncadd (%p1744_p12), [#allocation10], 4294967040  ;;  %v285_v2 = vld [vmem:[%s238_s11] sm:$0xff]  ;;  %v1046_v3 = vpack.c.bf16 %v351_v1, %v350_v0  ;;  %v286_v5 = vld [vmem:[%s238_s11 + $0x8] sm:$0xff]  ;;  %1022 = vmatprep.mubr.msk.f32.mxu1 %vm301_vm0, %v481_v59  ;;  %s284_s27 = scalar_lea.vmem [#allocation11], %s945_s21  ;;  %s1671_s24 = scalar_lea.hbm %s1721_s4, %s975_s5 }
  0x90   : > { %v289_v4 = vsub.f32 0.0, %v285_v2  ;;  %v304_v6 = vsub.f32 0.5, %v285_v2  ;;  %v290_v7 = vsub.f32 0.0, %v286_v5  ;;  %v305_v8 = vsub.f32 0.5, %v286_v5  ;;  %v287_v33 = vld [vmem:[%s1618_s23] sm:$0xff]  ;;  %v288_v34 = vld [vmem:[%s1618_s23 + $0x8] sm:$0xff] }
  0x91   : > { %v318_v9 = vsub.f32 0.8, %v285_v2  ;;  %v319_v10 = vsub.f32 0.8, %v286_v5  ;;  %1047 = vmatprep.subr.bf16.mxu0 %v1046_v3  ;;  %v482_v1 = vld [vmem:[#allocation8 + $0x8] sm:$0xff]  ;;  %s814_s10 = sshll.u32 %s284_s27, 4  ;;  %s1665_s10 = int_to_ptr.vmem [resolvable:$true] %s814_s10 }
  0x92   : > { %v291_v11 = vmul.f32 %v289_v4, %v289_v4  ;;  %v306_v12 = vmul.f32 %v304_v6, %v304_v6  ;;  %1049 = vmatpush3.bf16.msra.mxu0 %v1046_v3  ;;  %v292_v13 = vmul.f32 %v290_v7, %v290_v7  ;;  %v307_v14 = vmul.f32 %v305_v8, %v305_v8  ;;  %s801_s19 = scalar_lea.sflag [#allocation5], %s1609_s7  ;;  %s1274_s30 = scalar_lea.vmem %s1665_s10, 1024 }
  0x93   : > { %v320_v15 = vmul.f32 %v318_v9, %v318_v9  ;;  %v321_v16 = vmul.f32 %v319_v10, %v319_v10  ;;  %p1275_p1 = scmp.ne.s32.totalorder %s1665_s10, %s1274_s30  ;;  %p1745_p13 = scmp.ne.s32.totalorder %s1735_s13, 0 }
  0x94   : > { %v293_v17 = vmul.f32 -22.18071, %v291_v11  ;;  %v308_v18 = vmul.f32 -61.61308, %v306_v12  ;;  %v332_v19 = vmul.f32 0.0, %v291_v11  ;;  %v333_v29 = vmul.f32 0.0, %v292_v13 }
  0x95   : > { %v294_v20 = vmul.f32 -22.18071, %v292_v13  ;;  %v309_v21 = vmul.f32 -61.61308, %v307_v14  ;;  %v322_v22 = vmul.f32 -61.61308, %v320_v15  ;;  %p1276_p6 = pnand %p1275_p1, %p1745_p13 }
  0x96   : > { %v295_v23 = vmul.f32 1.442695, %v293_v17  ;;  %v310_v24 = vmul.f32 1.442695, %v308_v18  ;;  %v323_v25 = vmul.f32 -61.61308, %v321_v16 }
  0x97   : > { %v297_v26 = vmul.f32 1.442695, %v294_v20  ;;  %v312_v27 = vmul.f32 1.442695, %v309_v21  ;;  %v324_v28 = vmul.f32 1.442695, %v322_v22  ;;  %p1277_p10 = pneg %p1276_p6 }
  0x98   : > { %1142 = vpow2.f32 %v295_v23  ;;  %v326_v30 = vmul.f32 1.442695, %v323_v25  ;;  %v334_v31 = vmul.f32 1.442695, %v332_v19  ;;  %v336_v32 = vmul.f32 1.442695, %v333_v29 }
  0x99   : > { %1144 = vpow2.f32 %v297_v26  ;;  %s1360_s6 = smov [#allocation11]  }
  0x9a   : > { %1146 = vpow2.f32 %v310_v24  ;;  %s1278_s29 = sshll.u32 %s1360_s6, 4  ;;  %s1279_s29 = int_to_ptr.vmem [resolvable:$false] %s1278_s29 }
  0x9b   : > { %1148 = vpow2.f32 %v312_v27  ;;  %s1280_s0 = scalar_lea.vmem %s1279_s29, 2048  ;;  %p1281_p4 = scmp.lt.s32.totalorder %s1665_s10, %s1279_s29 }
  0x9c   : > { %1150 = vpow2.f32 %v324_v28  ;;  %p1282_p5 = scmp.lt.s32.totalorder %s1280_s0, %s1274_s30 }
  0x9d   : > { %1152 = vpow2.f32 %v326_v30 }
  0x9e   : > { %1154 = vpow2.f32 %v334_v31  ;;  %p1283_p3 = por %p1282_p5, %p1281_p4 }
  0x9f   : > { %1156 = vpow2.f32 %v336_v32 }
  0xa0   : > { %p1284_p7 = pnand %p1283_p3, %p1277_p10 }
  0xa2   : > { %v1143_v35 = vpop.eup %1142 }
  0xa3   : > { %v1145_v36 = vpop.eup %1144  ;;  %v299_v37 = vmul.f32 %v1143_v35, %v287_v33 }
  0xa4   : > { %v1147_v38 = vpop.eup %1146  ;;  %v300_v39 = vmul.f32 %v1145_v36, %v288_v34 }
  0xa5   : > { %v1149_v40 = vpop.eup %1148  ;;  %302 = vst.msk [vmem:[#allocation2] sm:$0xff] %vm301_vm0, %v299_v37  ;;  %v314_v41 = vmul.f32 %v1147_v38, %v287_v33 }
  0xa6   : > { %v1151_v42 = vpop.eup %1150  ;;  %303 = vst.msk [vmem:[#allocation2 + $0x8] sm:$0xff] %vm301_vm0, %v300_v39  ;;  %v315_v43 = vmul.f32 %v1149_v40, %v288_v34 }
  0xa7   : > { %v1153_v44 = vpop.eup %1152  ;;  %316 = vst.msk [vmem:[#allocation2 + $0x10] sm:$0xff] %vm301_vm0, %v314_v41  ;;  %v328_v45 = vmul.f32 %v1151_v42, %v287_v33 }
  0xa8   : > { %v1155_v46 = vpop.eup %1154  ;;  %317 = vst.msk [vmem:[#allocation2 + $0x18] sm:$0xff] %vm301_vm0, %v315_v43  ;;  %v329_v47 = vmul.f32 %v1153_v44, %v288_v34 }
  0xa9   : > { %v1157_v48 = vpop.eup %1156  ;;  %330 = vst.msk [vmem:[#allocation2 + $0x20] sm:$0xff] %vm301_vm0, %v328_v45  ;;  %v338_v49 = vmul.f32 %v1155_v46, %v287_v33 }
  0xaa   : > { %331 = vst.msk [vmem:[#allocation2 + $0x28] sm:$0xff] %vm301_vm0, %v329_v47  ;;  %v339_v50 = vmul.f32 %v1157_v48, %v288_v34 }
  0xab   : > { %340 = vst.msk [vmem:[#allocation2 + $0x30] sm:$0xff] %vm301_vm0, %v338_v49 }
  0xac   : > { %v342_v51 = vld [vmem:[#allocation2] sm:$0xff]  ;;  %341 = vst.msk [vmem:[#allocation2 + $0x38] sm:$0xff] %vm301_vm0, %v339_v50 }
  0xad   : > { %1006 = vmatprep.mubr.msk.f32.mxu0 %vm301_vm0, %v342_v51  ;;  %v343_v52 = vld [vmem:[#allocation2 + $0x8] sm:$0xff] }
  0xae   : > { %1007 = vmatmul.mubr.msk.f32.vlgmr.msra.gmra.mrb[0].mxu0 %vm301_vm0, %v343_v52  ;;  %v344_v53 = vld [vmem:[#allocation2 + $0x10] sm:$0xff] }
  0xaf   : > { %1009 = vmatprep.mubr.msk.f32.mxu0 %vm301_vm0, %v344_v53  ;;  %v345_v54 = vld [vmem:[#allocation2 + $0x18] sm:$0xff] }
  0xb0   : > { %v346_v55 = vld [vmem:[#allocation2 + $0x20] sm:$0xff] }
  0xb1   : > { %v347_v56 = vld [vmem:[#allocation2 + $0x28] sm:$0xff] }
  0xb2   : > { %1010 = vmatmul.mubr.msk.f32.gmra.mrb[2].mxu0 %vm301_vm0, %v345_v54  ;;  %v348_v57 = vld [vmem:[#allocation2 + $0x30] sm:$0xff] }
  0xb3   : > { %1012 = vmatprep.mubr.msk.f32.mxu0 %vm301_vm0, %v346_v55  ;;  %v349_v58 = vld [vmem:[#allocation2 + $0x38] sm:$0xff] }
  0xb6   : > { %1013 = vmatmul.mubr.msk.f32.gmra.mrb[4].mxu0 %vm301_vm0, %v347_v56 }
  0xb7   : > { %1015 = vmatprep.mubr.msk.f32.mxu0 %vm301_vm0, %v348_v57 }
  0xba   : > { %1016 = vmatmul.mubr.msk.f32.gmra.mrb[6].mxu0 %vm301_vm0, %v349_v58 }
 0x181   : > { %v1008_v60 = vpop.f32.mrb[0].mxu0 }
 0x182   : > { %v442_v61 = vpop.f32.mrb[1].mxu0 }
 0x183   : > { %v1050_v62 = vpack.c.bf16 %v1008_v60, %v442_v61 }
 0x185   : > { %v1011_v63 = vpop.f32.mrb[2].mxu0  ;;  %1051 = vmatprep.subr.bf16.mxu1 %v1050_v62 }
 0x186   : > { %v452_v0 = vpop.f32.mrb[3].mxu0  ;;  %1053 = vmatpush3.bf16.msra.mxu1 %v1050_v62 }
 0x187   : > { %v1054_v2 = vpack.c.bf16 %v1011_v63, %v452_v0 }
 0x189   : > { %v1014_v3 = vpop.f32.mrb[4].mxu0  ;;  %1023 = vmatmul.mubr.msk.f32.vlgmr.msra.gmra.mrb[0].mxu1 %vm301_vm0, %v482_v1  ;;  %1055 = vmatprep.subr.bf16.mxu1 %v1054_v2 }
 0x18a   : > { %v462_v4 = vpop.f32.mrb[5].mxu0  ;;  %1057 = vmatpush3.bf16.msra.mxu1 %v1054_v2  ;;  %1029 = vmatprep.mubr.msk.f32.mxu1 %vm301_vm0, %v481_v59 }
 0x18b   : > { %v1058_v5 = vpack.c.bf16 %v1014_v3, %v462_v4 }
 0x18d   : > { %v1017_v6 = vpop.f32.mrb[6].mxu0  ;;  %1030 = vmatmul.mubr.msk.f32.vlgmr.msra.gmra.mrb[2].mxu1 %vm301_vm0, %v482_v1  ;;  %1059 = vmatprep.subr.bf16.mxu1 %v1058_v5 }
 0x18e   : > { %v472_v7 = vpop.f32.mrb[7].mxu0  ;;  %1061 = vmatpush3.bf16.msra.mxu1 %v1058_v5  ;;  %1036 = vmatprep.mubr.msk.f32.mxu1 %vm301_vm0, %v481_v59 }
 0x18f   : > { %v1062_v8 = vpack.c.bf16 %v1017_v6, %v472_v7 }
 0x191   : > { %1037 = vmatmul.mubr.msk.f32.vlgmr.msra.gmra.mrb[4].mxu1 %vm301_vm0, %v482_v1  ;;  %1063 = vmatprep.subr.bf16.mxu1 %v1062_v8 }
 0x192   : > { %1065 = vmatpush3.bf16.msra.mxu1 %v1062_v8  ;;  %1043 = vmatprep.mubr.msk.f32.mxu1 %vm301_vm0, %v481_v59 }
 0x195   : > { %1044 = vmatmul.mubr.msk.f32.vlgmr.msra.gmra.mrb[6].mxu1 %vm301_vm0, %v482_v1 }
 0x25c   : > { %v1024_v9 = vpop.f32.mrb[0].mxu1 }
 0x25d   : > { %565 = vst.msk [vmem:[%s284_s27 + $0x8] sm:$0xff] %vm301_vm0, %v1024_v9  ;;  %v555_v10 = vpop.f32.mrb[1].mxu1 }
 0x25e   : > { %564 = vst.msk [vmem:[%s284_s27] sm:$0xff] %vm301_vm0, %v555_v10 }
 0x260   : > { %v1031_v11 = vpop.f32.mrb[2].mxu1 }
 0x261   : > { %959 = vst.msk [vmem:[%s284_s27 + $0x18] sm:$0xff] %vm301_vm0, %v1031_v11  ;;  %v632_v12 = vpop.f32.mrb[3].mxu1 }
 0x262   : > { %958 = vst.msk [vmem:[%s284_s27 + $0x10] sm:$0xff] %vm301_vm0, %v632_v12 }
 0x264   : > { %v1038_v13 = vpop.f32.mrb[4].mxu1 }
 0x265   : > { %963 = vst.msk [vmem:[%s284_s27 + $0x28] sm:$0xff] %vm301_vm0, %v1038_v13  ;;  %v710_v14 = vpop.f32.mrb[5].mxu1 }
 0x266   : > { %962 = vst.msk [vmem:[%s284_s27 + $0x20] sm:$0xff] %vm301_vm0, %v710_v14 }
 0x268   : > { %v1045_v15 = vpop.f32.mrb[6].mxu1 }
 0x269   : > { %967 = vst.msk [vmem:[%s284_s27 + $0x38] sm:$0xff] %vm301_vm0, %v1045_v15  ;;  %v788_v16 = vpop.f32.mrb[7].mxu1 }
 0x26a   : > { %966 = vst.msk [vmem:[%s284_s27 + $0x30] sm:$0xff] %vm301_vm0, %v788_v16 }
 0x26b   : > { %1287 = shalt.err (!%p1284_p7)
}
 0x26c   : > { %s1288_s28 = scalar_lea.hbm %s1671_s24, 1024  ;;  %s1292_s25 = scalar_lea.hbm %s1721_s4, 2048 }
 0x26d   : > { %p1289_p9 = scmp.ne.s32.totalorder %s1671_s24, %s1288_s28  ;;  %p1293_p11 = scmp.lt.u32.totalorder %s1671_s24, %s1721_s4 }
 0x26e   : > { %p1294_p2 = scmp.lt.u32.totalorder %s1292_s25, %s1288_s28  ;;  %p1296_p1 = scmp.lt.u32.totalorder %s1288_s28, %s1671_s24 }
 0x26f   : > { %p1290_p0 = pnand %p1289_p9, %p1745_p13 }
 0x270   : > { %p1295_p12 = por %p1294_p2, %p1293_p11 }
 0x271   : > { %p1291_p8 = pneg %p1290_p0 }
 0x272   : > { %p1297_p6 = por %p1296_p1, %p1295_p12 }
 0x274   : > { %p1298_p10 = pnand %p1297_p6, %p1291_p8 }
 0x276   : > { %1301 = shalt.err (!%p1298_p10)
}
 0x277   : > { %s1361_s21 = smov 128   ;;  %s1362_s27 = smov 8  }
 0x278   : > { %1078 = dma.vmem_to_hbm [thread:$0]  (%p1745_p13), %s1665_s10, 1024, %s1671_s24, %s801_s19, %s1361_s21, %s1361_s21, %s1362_s27  }
 0x279 PF: > { %s829_s5 = sand.u32 1, %s1340_s15   ;;  %p1746_p4 = scmp.ne.s32.totalorder %s1731_s22, 0 }
 0x27a   : > { %p1747_p5 = scmp.ge.s32.totalorder %s1352_s18, 2  ;;  %s830_s8 = scalar_lea.sflag [#allocation5], %s829_s5 }
 0x27c   : > { %p1095_p3 = pnand %p1747_p5, %p1746_p4 }
 0x27e   : > { %1335 = dma.done.wait (!%p1095_p3), %s830_s8, 1024  }
 0x27f   : > { %1337 = vsyncadd (!%p1095_p3), %s830_s8, 4294966272  ;;  %p21_p7 = scmp.ge.s32.totalorder %s1504_s26, 4   ;;  %s1748_s15 = smov %s1344_s16 }
 0x280   : > { %s1749_s16 = smov %s1348_s17  ;;  %s1750_s17 = smov %s1520_s14 }
 0x281   : > { %s1751_s18 = smov %s1504_s26  ;;  %23 = sbr.rel (!%p21_p7) target bundleno = 10 (0xa), region = 105 }
 0x288   :  { %835 = vsyncpa [#allocation4], 1 }
 0x289   :  { %837 = vsyncpa [#allocation4 + $0x1], 1 }
 0x28a   :  { %838 = vsyncpa [#allocation7], 1 }
 0x28b   :  { %840 = vsyncpa [#allocation7 + $0x1], 1 }
 0x28c   :  { %841 = vsyncpa [#allocation10], 1 }
 0x28d   :  { %842 = vsyncpa [#allocation5], 1 }
 0x28e   :  { %844 = vsyncpa [#allocation5 + $0x1], 1 }

</bundles_post_ra>
